<compile_context>
chip_gen: v5e
topology: v5e:2x2
jax: 0.10.0
libtpu: 0.0.40
codegen_flags: <defaults>
</compile_context>

<pallas_src>
import functools

import jax
import jax.numpy as jnp
from jax.experimental import pallas as pl
from jax.experimental.pallas import tpu as pltpu

NEG_BIG = -9.0e15          # -9000000000000000.0 in the reference
LRELU_ALPHA = 0.2          # negative_slope used in F.leaky_relu
LANE = 128                 # lane-dense feature padding

_VMEM = pltpu.MemorySpace.VMEM
_SMEM = pltpu.MemorySpace.SMEM


def _elu(x):
    # ELU with alpha=1.0 (PyTorch default).
    return jnp.where(x > 0, x, jnp.exp(jnp.minimum(x, 0.0)) - 1.0)


def _gal_layer(x, mask_bias, w_ref, bw_ref, a1_ref, a2_ref, ab_ref):
    """One GraphAttentionLayer on in-register activations.

    x        : (N, Fp) f32, lanes >= real in_features are zero
    mask_bias: (N, N)  f32, 0 where adj>0 else NEG_BIG
    w_ref    : (Fp, Fp) bf16   W.weight^T (zero-padded)
    bw_ref   : (1, Fp)  f32    W.bias
    a1_ref   : (Fp, 1)  f32    source half of a.weight
    a2_ref   : (1, Fp)  f32    destination half of a.weight
    ab_ref   : (1, 1)   f32    a.bias (SMEM scalar)
    """
    # h = W(input): bf16 MXU operands, f32 accumulation.
    h = jnp.dot(x.astype(jnp.bfloat16), w_ref[...],
                preferred_element_type=jnp.float32) + bw_ref[...]          # (N, Fp)

    # e[i, j] = leaky_relu(h[i]·a_src + h[j]·a_dst + a_bias)
    e_src = jnp.dot(h, a1_ref[...],
                    preferred_element_type=jnp.float32) + ab_ref[0, 0]     # (N, 1)
    e_dst = jax.lax.dot_general(                                           # (1, N)
        a2_ref[...], h,
        dimension_numbers=(((1,), (1,)), ((), ())),
        preferred_element_type=jnp.float32)
    e = e_src + e_dst
    e = jnp.where(e > 0, e, LRELU_ALPHA * e)          # leaky_relu
    e = e + mask_bias                                 # adjacency masking (additive bias)

    # row softmax (dim=1) with deferred normalization
    m = jnp.max(e, axis=1, keepdims=True)
    p = jnp.exp(e - m)
    l = jnp.sum(p, axis=1, keepdims=True)
    # TODO(synk): attention dropout omitted (deterministic eval-mode identity).
    acc = jnp.dot(p.astype(jnp.bfloat16), h.astype(jnp.bfloat16),
                  preferred_element_type=jnp.float32)                      # (N, Fp)
    hp = acc * pl.reciprocal(l, approx=True)
    return _elu(hp)


def _make_gat_kernel(num_hidden_layers, out_dim):
    """Fused GAT forward: hidden layers + head-sum ELU + out layer + log_softmax."""

    def kernel(*refs):
        x_ref, mask_ref = refs[0], refs[1]
        out_ref = refs[-1]
        prm = refs[2:-1]                      # 5 refs per layer

        mask_bias = mask_ref[...].astype(jnp.float32)   # loaded once, reused by all layers
        x = x_ref[...]

        # x = self.dropout(x) -> identity (eval mode)
        for i in range(num_hidden_layers):
            x = _gal_layer(x, mask_bias, *prm[5 * i:5 * (i + 1)])

        # torch.sum(x, dim=1): identity over the size-1 heads axis, then ELU.
        x = _elu(x)
        # x = F.dropout(x, p) -> identity (deterministic)

        base = 5 * num_hidden_layers
        x = _gal_layer(x, mask_bias, *prm[base:base + 5])

        # log_softmax over the REAL output columns only (exclude lane padding).
        col = jax.lax.broadcasted_iota(jnp.int32, x.shape, 1)
        z = jnp.where(col < out_dim, x, NEG_BIG)
        m = jnp.max(z, axis=1, keepdims=True)
        s = z - m
        out_ref[...] = s - jnp.log(jnp.sum(jnp.exp(s), axis=1, keepdims=True))

    return kernel


# ---------------- parameter construction / padding ----------------

def _init_linear(key, in_f, out_f):
    # PyTorch nn.Linear default init: U(-1/sqrt(in_f), 1/sqrt(in_f)).
    kw, kb = jax.random.split(key)
    lim = 1.0 / (in_f ** 0.5)
    w = jax.random.uniform(kw, (out_f, in_f), jnp.float32, -lim, lim)
    b = jax.random.uniform(kb, (out_f,), jnp.float32, -lim, lim)
    return w, b


def init_gal_params(key, in_f, out_f):
    k1, k2 = jax.random.split(key)
    W, bW = _init_linear(k1, in_f, out_f)        # (out, in), (out,)
    aW, ab = _init_linear(k2, 2 * out_f, 1)      # (1, 2*out), (1,)
    return {
        "w": jnp.asarray(W.T),                   # (in, out)
        "bw": bW.reshape(1, out_f),
        "a1": jnp.asarray(aW[:, :out_f].T),      # (out, 1)
        "a2": jnp.asarray(aW[:, out_f:]),        # (1, out)
        "ab": ab.reshape(1, 1),
    }


def _pad2(a, rows, cols):
    r, c = a.shape
    return jnp.pad(a, ((0, rows - r), (0, cols - c)))


def _prep_layer(p):
    """Zero-pad feature dims to LANE; weight of the big matmul stored bf16."""
    return [
        _pad2(p["w"], LANE, LANE).astype(jnp.bfloat16),   # (Fp, Fp) bf16
        _pad2(p["bw"], 1, LANE),                          # (1, Fp)  f32
        _pad2(p["a1"], LANE, 1),                          # (Fp, 1)  f32
        _pad2(p["a2"], 1, LANE),                          # (1, Fp)  f32
        p["ab"],                                          # (1, 1)   f32 (SMEM)
    ]


# ---------------- full GAT forward (single pallas_call) ----------------

@functools.partial(jax.jit, static_argnames=("num_heads",))
def gat_forward(x, adj, layer_params, out_params, num_heads):
    # The reference module is only shape-consistent for num_heads == 1; the
    # heads-sum is then an identity (see fidelity notes above).
    assert num_heads == 1
    n, f_in = x.shape
    out_dim = out_params["w"].shape[1]
    n_pad = ((n + 7) // 8) * 8                 # sublane alignment

    x_p = jnp.pad(x, ((0, n_pad - n), (0, LANE - f_in)))
    adj_p = jnp.pad(adj, ((0, n_pad - n), (0, n_pad - n)))
    # Precompute the additive adjacency mask bias once, in bf16, reused by all layers.
    mask_bias = jnp.where(adj_p > 0, 0.0, NEG_BIG).astype(jnp.bfloat16)

    flat = []
    for p in layer_params:
        flat += _prep_layer(p)
    flat += _prep_layer(out_params)

    vmem = pl.BlockSpec(memory_space=_VMEM)
    smem = pl.BlockSpec(memory_space=_SMEM)
    in_specs = [vmem, vmem] + [vmem, vmem, vmem, vmem, smem] * (len(layer_params) + 1)

    out = pl.pallas_call(
        _make_gat_kernel(len(layer_params), out_dim),
        out_shape=jax.ShapeDtypeStruct((n_pad, LANE), jnp.float32),
        in_specs=in_specs,
        out_specs=vmem,
    )(x_p, mask_bias, *flat)
    return out[:n, :out_dim]


if __name__ == "__main__":
    key = jax.random.PRNGKey(0)
    N = 16
    input_dim, hidden_dim, output_dim = 8, 32, 8
    num_layers, num_heads = 2, 1

    k_x, k_adj, k_p = jax.random.split(key, 3)
    x = jax.random.normal(k_x, (N, input_dim), dtype=jnp.float32)
    adj = (jax.random.uniform(k_adj, (N, N)) > 0.5).astype(jnp.float32)
    adj = jnp.maximum(adj, jnp.eye(N, dtype=jnp.float32))  # self-loops

    keys = jax.random.split(k_p, num_layers + 1)
    layer_params = []
    in_f = input_dim
    for i in range(num_layers):
        layer_params.append(init_gal_params(keys[i], in_f, hidden_dim))
        in_f = hidden_dim * num_heads
    out_params = init_gal_params(keys[-1], hidden_dim * num_heads, output_dim)

    out = gat_forward(x, adj, layer_params, out_params, num_heads=num_heads)
    out = jax.block_until_ready(out)

    assert out.shape == (N, output_dim)
    assert bool(jnp.all(jnp.isfinite(out)))
    # log_softmax rows should sum to ~1 after exp
    assert bool(jnp.allclose(jnp.sum(jnp.exp(out), axis=1), 1.0, atol=1e-3))
    print("KERNEL_OK")
</pallas_src>

<mosaic_0001>
module attributes {stable_mosaic.version = 11 : i64} {
  func.func @kernel(%arg0: memref<16x128xf32, #tpu.memory_space<vmem>>, %arg1: memref<16x16xbf16, #tpu.memory_space<vmem>>, %arg2: memref<128x128xbf16, #tpu.memory_space<vmem>>, %arg3: memref<1x128xf32, #tpu.memory_space<vmem>>, %arg4: memref<128x1xf32, #tpu.memory_space<vmem>>, %arg5: memref<1x128xf32, #tpu.memory_space<vmem>>, %arg6: memref<1x1xf32, #tpu.memory_space<smem>>, %arg7: memref<128x128xbf16, #tpu.memory_space<vmem>>, %arg8: memref<1x128xf32, #tpu.memory_space<vmem>>, %arg9: memref<128x1xf32, #tpu.memory_space<vmem>>, %arg10: memref<1x128xf32, #tpu.memory_space<vmem>>, %arg11: memref<1x1xf32, #tpu.memory_space<smem>>, %arg12: memref<128x128xbf16, #tpu.memory_space<vmem>>, %arg13: memref<1x128xf32, #tpu.memory_space<vmem>>, %arg14: memref<128x1xf32, #tpu.memory_space<vmem>>, %arg15: memref<1x128xf32, #tpu.memory_space<vmem>>, %arg16: memref<1x1xf32, #tpu.memory_space<smem>>, %arg17: memref<16x128xf32, #tpu.memory_space<vmem>>) attributes {dimension_semantics = [], scalar_prefetch = 0 : i64, scratch_operands = 0 : i64, tpu.core_type = #tpu.core_type<tc>} {
    %c0 = arith.constant 0 : index
    %c0_0 = arith.constant 0 : index
    %0 = vector.load %arg1[%c0, %c0_0] : memref<16x16xbf16, #tpu.memory_space<vmem>>, vector<16x16xbf16>
    %1 = arith.extf %0 : vector<16x16xbf16> to vector<16x16xf32>
    %c0_1 = arith.constant 0 : index
    %c0_2 = arith.constant 0 : index
    %2 = vector.load %arg0[%c0_1, %c0_2] : memref<16x128xf32, #tpu.memory_space<vmem>>, vector<16x128xf32>
    %3 = arith.truncf %2 : vector<16x128xf32> to vector<16x128xbf16>
    %c0_3 = arith.constant 0 : index
    %c0_4 = arith.constant 0 : index
    %4 = vector.load %arg2[%c0_3, %c0_4] : memref<128x128xbf16, #tpu.memory_space<vmem>>, vector<128x128xbf16>
    %cst = arith.constant dense<0.000000e+00> : vector<16x128xf32>
    %5 = tpu.matmul %3, %4, %cst {dimension_numbers = #tpu.dot_dimension_numbers<[1], [0], [0], [1], [0, 0, 1, 1], [], []>} : vector<16x128xbf16>, vector<128x128xbf16>, vector<16x128xf32> -> vector<16x128xf32>
    %c0_5 = arith.constant 0 : index
    %c0_6 = arith.constant 0 : index
    %6 = vector.load %arg3[%c0_5, %c0_6] : memref<1x128xf32, #tpu.memory_space<vmem>>, vector<1x128xf32>
    %7 = vector.broadcast %6 : vector<1x128xf32> to vector<16x128xf32>
    %8 = arith.addf %5, %7 : vector<16x128xf32>
    %c0_7 = arith.constant 0 : index
    %c0_8 = arith.constant 0 : index
    %9 = vector.load %arg4[%c0_7, %c0_8] : memref<128x1xf32, #tpu.memory_space<vmem>>, vector<128x1xf32>
    %cst_9 = arith.constant dense<0.000000e+00> : vector<16x1xf32>
    %10 = tpu.matmul %8, %9, %cst_9 {dimension_numbers = #tpu.dot_dimension_numbers<[1], [0], [0], [1], [0, 0, 1, 1], [], []>} : vector<16x128xf32>, vector<128x1xf32>, vector<16x1xf32> -> vector<16x1xf32>
    %c0_10 = arith.constant 0 : index
    %c0_11 = arith.constant 0 : index
    %11 = memref.load %arg6[%c0_10, %c0_11] : memref<1x1xf32, #tpu.memory_space<smem>>
    %12 = vector.broadcast %11 : f32 to vector<16x1xf32>
    %13 = arith.addf %10, %12 : vector<16x1xf32>
    %c0_12 = arith.constant 0 : index
    %c0_13 = arith.constant 0 : index
    %14 = vector.load %arg5[%c0_12, %c0_13] : memref<1x128xf32, #tpu.memory_space<vmem>>, vector<1x128xf32>
    %cst_14 = arith.constant dense<0.000000e+00> : vector<1x16xf32>
    %15 = tpu.matmul %14, %8, %cst_14 {dimension_numbers = #tpu.dot_dimension_numbers<[1], [1], [0], [0], [0, 0, 1, 0], [], []>} : vector<1x128xf32>, vector<16x128xf32>, vector<1x16xf32> -> vector<1x16xf32>
    %16 = vector.broadcast %13 : vector<16x1xf32> to vector<16x16xf32>
    %17 = vector.broadcast %15 : vector<1x16xf32> to vector<16x16xf32>
    %18 = arith.addf %16, %17 : vector<16x16xf32>
    %cst_15 = arith.constant 0.000000e+00 : f32
    %19 = vector.broadcast %cst_15 : f32 to vector<16x16xf32>
    %20 = arith.cmpf ogt, %18, %19 : vector<16x16xf32>
    %cst_16 = arith.constant 2.000000e-01 : f32
    %21 = vector.broadcast %cst_16 : f32 to vector<16x16xf32>
    %22 = arith.mulf %21, %18 : vector<16x16xf32>
    %23 = arith.select %20, %18, %22 : vector<16x16xi1>, vector<16x16xf32>
    %24 = arith.addf %23, %1 : vector<16x16xf32>
    %cst_17 = arith.constant dense<0xFF800000> : vector<16xf32>
    %25 = vector.multi_reduction <maximumf>, %24, %cst_17 [1] : vector<16x16xf32> to vector<16xf32>
    %26 = vector.shape_cast %25 : vector<16xf32> to vector<16x1xf32>
    %27 = vector.broadcast %26 : vector<16x1xf32> to vector<16x16xf32>
    %28 = arith.subf %24, %27 : vector<16x16xf32>
    %29 = math.exp %28 : vector<16x16xf32>
    %cst_18 = arith.constant dense<0.000000e+00> : vector<16xf32>
    %30 = vector.multi_reduction <add>, %29, %cst_18 [1] : vector<16x16xf32> to vector<16xf32>
    %31 = vector.shape_cast %30 : vector<16xf32> to vector<16x1xf32>
    %32 = arith.truncf %29 : vector<16x16xf32> to vector<16x16xbf16>
    %33 = arith.truncf %8 : vector<16x128xf32> to vector<16x128xbf16>
    %cst_19 = arith.constant dense<0.000000e+00> : vector<16x128xf32>
    %34 = tpu.matmul %32, %33, %cst_19 {dimension_numbers = #tpu.dot_dimension_numbers<[1], [0], [0], [1], [0, 0, 1, 1], [], []>} : vector<16x16xbf16>, vector<16x128xbf16>, vector<16x128xf32> -> vector<16x128xf32>
    %35 = tpu.reciprocal %31 {approx = true} : vector<16x1xf32> -> vector<16x1xf32>
    %36 = vector.broadcast %35 : vector<16x1xf32> to vector<16x128xf32>
    %37 = arith.mulf %34, %36 : vector<16x128xf32>
    %cst_20 = arith.constant 0.000000e+00 : f32
    %38 = vector.broadcast %cst_20 : f32 to vector<16x128xf32>
    %39 = arith.cmpf ogt, %37, %38 : vector<16x128xf32>
    %cst_21 = arith.constant 0.000000e+00 : f32
    %40 = vector.broadcast %cst_21 : f32 to vector<16x128xf32>
    %41 = arith.minimumf %37, %40 : vector<16x128xf32>
    %42 = math.exp %41 : vector<16x128xf32>
    %cst_22 = arith.constant 1.000000e+00 : f32
    %43 = vector.broadcast %cst_22 : f32 to vector<16x128xf32>
    %44 = arith.subf %42, %43 : vector<16x128xf32>
    %45 = arith.select %39, %37, %44 : vector<16x128xi1>, vector<16x128xf32>
    %46 = arith.truncf %45 : vector<16x128xf32> to vector<16x128xbf16>
    %c0_23 = arith.constant 0 : index
    %c0_24 = arith.constant 0 : index
    %47 = vector.load %arg7[%c0_23, %c0_24] : memref<128x128xbf16, #tpu.memory_space<vmem>>, vector<128x128xbf16>
    %cst_25 = arith.constant dense<0.000000e+00> : vector<16x128xf32>
    %48 = tpu.matmul %46, %47, %cst_25 {dimension_numbers = #tpu.dot_dimension_numbers<[1], [0], [0], [1], [0, 0, 1, 1], [], []>} : vector<16x128xbf16>, vector<128x128xbf16>, vector<16x128xf32> -> vector<16x128xf32>
    %c0_26 = arith.constant 0 : index
    %c0_27 = arith.constant 0 : index
    %49 = vector.load %arg8[%c0_26, %c0_27] : memref<1x128xf32, #tpu.memory_space<vmem>>, vector<1x128xf32>
    %50 = vector.broadcast %49 : vector<1x128xf32> to vector<16x128xf32>
    %51 = arith.addf %48, %50 : vector<16x128xf32>
    %c0_28 = arith.constant 0 : index
    %c0_29 = arith.constant 0 : index
    %52 = vector.load %arg9[%c0_28, %c0_29] : memref<128x1xf32, #tpu.memory_space<vmem>>, vector<128x1xf32>
    %cst_30 = arith.constant dense<0.000000e+00> : vector<16x1xf32>
    %53 = tpu.matmul %51, %52, %cst_30 {dimension_numbers = #tpu.dot_dimension_numbers<[1], [0], [0], [1], [0, 0, 1, 1], [], []>} : vector<16x128xf32>, vector<128x1xf32>, vector<16x1xf32> -> vector<16x1xf32>
    %c0_31 = arith.constant 0 : index
    %c0_32 = arith.constant 0 : index
    %54 = memref.load %arg11[%c0_31, %c0_32] : memref<1x1xf32, #tpu.memory_space<smem>>
    %55 = vector.broadcast %54 : f32 to vector<16x1xf32>
    %56 = arith.addf %53, %55 : vector<16x1xf32>
    %c0_33 = arith.constant 0 : index
    %c0_34 = arith.constant 0 : index
    %57 = vector.load %arg10[%c0_33, %c0_34] : memref<1x128xf32, #tpu.memory_space<vmem>>, vector<1x128xf32>
    %cst_35 = arith.constant dense<0.000000e+00> : vector<1x16xf32>
    %58 = tpu.matmul %57, %51, %cst_35 {dimension_numbers = #tpu.dot_dimension_numbers<[1], [1], [0], [0], [0, 0, 1, 0], [], []>} : vector<1x128xf32>, vector<16x128xf32>, vector<1x16xf32> -> vector<1x16xf32>
    %59 = vector.broadcast %56 : vector<16x1xf32> to vector<16x16xf32>
    %60 = vector.broadcast %58 : vector<1x16xf32> to vector<16x16xf32>
    %61 = arith.addf %59, %60 : vector<16x16xf32>
    %cst_36 = arith.constant 0.000000e+00 : f32
    %62 = vector.broadcast %cst_36 : f32 to vector<16x16xf32>
    %63 = arith.cmpf ogt, %61, %62 : vector<16x16xf32>
    %cst_37 = arith.constant 2.000000e-01 : f32
    %64 = vector.broadcast %cst_37 : f32 to vector<16x16xf32>
    %65 = arith.mulf %64, %61 : vector<16x16xf32>
    %66 = arith.select %63, %61, %65 : vector<16x16xi1>, vector<16x16xf32>
    %67 = arith.addf %66, %1 : vector<16x16xf32>
    %cst_38 = arith.constant dense<0xFF800000> : vector<16xf32>
    %68 = vector.multi_reduction <maximumf>, %67, %cst_38 [1] : vector<16x16xf32> to vector<16xf32>
    %69 = vector.shape_cast %68 : vector<16xf32> to vector<16x1xf32>
    %70 = vector.broadcast %69 : vector<16x1xf32> to vector<16x16xf32>
    %71 = arith.subf %67, %70 : vector<16x16xf32>
    %72 = math.exp %71 : vector<16x16xf32>
    %cst_39 = arith.constant dense<0.000000e+00> : vector<16xf32>
    %73 = vector.multi_reduction <add>, %72, %cst_39 [1] : vector<16x16xf32> to vector<16xf32>
    %74 = vector.shape_cast %73 : vector<16xf32> to vector<16x1xf32>
    %75 = arith.truncf %72 : vector<16x16xf32> to vector<16x16xbf16>
    %76 = arith.truncf %51 : vector<16x128xf32> to vector<16x128xbf16>
    %cst_40 = arith.constant dense<0.000000e+00> : vector<16x128xf32>
    %77 = tpu.matmul %75, %76, %cst_40 {dimension_numbers = #tpu.dot_dimension_numbers<[1], [0], [0], [1], [0, 0, 1, 1], [], []>} : vector<16x16xbf16>, vector<16x128xbf16>, vector<16x128xf32> -> vector<16x128xf32>
    %78 = tpu.reciprocal %74 {approx = true} : vector<16x1xf32> -> vector<16x1xf32>
    %79 = vector.broadcast %78 : vector<16x1xf32> to vector<16x128xf32>
    %80 = arith.mulf %77, %79 : vector<16x128xf32>
    %cst_41 = arith.constant 0.000000e+00 : f32
    %81 = vector.broadcast %cst_41 : f32 to vector<16x128xf32>
    %82 = arith.cmpf ogt, %80, %81 : vector<16x128xf32>
    %cst_42 = arith.constant 0.000000e+00 : f32
    %83 = vector.broadcast %cst_42 : f32 to vector<16x128xf32>
    %84 = arith.minimumf %80, %83 : vector<16x128xf32>
    %85 = math.exp %84 : vector<16x128xf32>
    %cst_43 = arith.constant 1.000000e+00 : f32
    %86 = vector.broadcast %cst_43 : f32 to vector<16x128xf32>
    %87 = arith.subf %85, %86 : vector<16x128xf32>
    %88 = arith.select %82, %80, %87 : vector<16x128xi1>, vector<16x128xf32>
    %cst_44 = arith.constant 0.000000e+00 : f32
    %89 = vector.broadcast %cst_44 : f32 to vector<16x128xf32>
    %90 = arith.cmpf ogt, %88, %89 : vector<16x128xf32>
    %cst_45 = arith.constant 0.000000e+00 : f32
    %91 = vector.broadcast %cst_45 : f32 to vector<16x128xf32>
    %92 = arith.minimumf %88, %91 : vector<16x128xf32>
    %93 = math.exp %92 : vector<16x128xf32>
    %cst_46 = arith.constant 1.000000e+00 : f32
    %94 = vector.broadcast %cst_46 : f32 to vector<16x128xf32>
    %95 = arith.subf %93, %94 : vector<16x128xf32>
    %96 = arith.select %90, %88, %95 : vector<16x128xi1>, vector<16x128xf32>
    %97 = arith.truncf %96 : vector<16x128xf32> to vector<16x128xbf16>
    %c0_47 = arith.constant 0 : index
    %c0_48 = arith.constant 0 : index
    %98 = vector.load %arg12[%c0_47, %c0_48] : memref<128x128xbf16, #tpu.memory_space<vmem>>, vector<128x128xbf16>
    %cst_49 = arith.constant dense<0.000000e+00> : vector<16x128xf32>
    %99 = tpu.matmul %97, %98, %cst_49 {dimension_numbers = #tpu.dot_dimension_numbers<[1], [0], [0], [1], [0, 0, 1, 1], [], []>} : vector<16x128xbf16>, vector<128x128xbf16>, vector<16x128xf32> -> vector<16x128xf32>
    %c0_50 = arith.constant 0 : index
    %c0_51 = arith.constant 0 : index
    %100 = vector.load %arg13[%c0_50, %c0_51] : memref<1x128xf32, #tpu.memory_space<vmem>>, vector<1x128xf32>
    %101 = vector.broadcast %100 : vector<1x128xf32> to vector<16x128xf32>
    %102 = arith.addf %99, %101 : vector<16x128xf32>
    %c0_52 = arith.constant 0 : index
    %c0_53 = arith.constant 0 : index
    %103 = vector.load %arg14[%c0_52, %c0_53] : memref<128x1xf32, #tpu.memory_space<vmem>>, vector<128x1xf32>
    %cst_54 = arith.constant dense<0.000000e+00> : vector<16x1xf32>
    %104 = tpu.matmul %102, %103, %cst_54 {dimension_numbers = #tpu.dot_dimension_numbers<[1], [0], [0], [1], [0, 0, 1, 1], [], []>} : vector<16x128xf32>, vector<128x1xf32>, vector<16x1xf32> -> vector<16x1xf32>
    %c0_55 = arith.constant 0 : index
    %c0_56 = arith.constant 0 : index
    %105 = memref.load %arg16[%c0_55, %c0_56] : memref<1x1xf32, #tpu.memory_space<smem>>
    %106 = vector.broadcast %105 : f32 to vector<16x1xf32>
    %107 = arith.addf %104, %106 : vector<16x1xf32>
    %c0_57 = arith.constant 0 : index
    %c0_58 = arith.constant 0 : index
    %108 = vector.load %arg15[%c0_57, %c0_58] : memref<1x128xf32, #tpu.memory_space<vmem>>, vector<1x128xf32>
    %cst_59 = arith.constant dense<0.000000e+00> : vector<1x16xf32>
    %109 = tpu.matmul %108, %102, %cst_59 {dimension_numbers = #tpu.dot_dimension_numbers<[1], [1], [0], [0], [0, 0, 1, 0], [], []>} : vector<1x128xf32>, vector<16x128xf32>, vector<1x16xf32> -> vector<1x16xf32>
    %110 = vector.broadcast %107 : vector<16x1xf32> to vector<16x16xf32>
    %111 = vector.broadcast %109 : vector<1x16xf32> to vector<16x16xf32>
    %112 = arith.addf %110, %111 : vector<16x16xf32>
    %cst_60 = arith.constant 0.000000e+00 : f32
    %113 = vector.broadcast %cst_60 : f32 to vector<16x16xf32>
    %114 = arith.cmpf ogt, %112, %113 : vector<16x16xf32>
    %cst_61 = arith.constant 2.000000e-01 : f32
    %115 = vector.broadcast %cst_61 : f32 to vector<16x16xf32>
    %116 = arith.mulf %115, %112 : vector<16x16xf32>
    %117 = arith.select %114, %112, %116 : vector<16x16xi1>, vector<16x16xf32>
    %118 = arith.addf %117, %1 : vector<16x16xf32>
    %cst_62 = arith.constant dense<0xFF800000> : vector<16xf32>
    %119 = vector.multi_reduction <maximumf>, %118, %cst_62 [1] : vector<16x16xf32> to vector<16xf32>
    %120 = vector.shape_cast %119 : vector<16xf32> to vector<16x1xf32>
    %121 = vector.broadcast %120 : vector<16x1xf32> to vector<16x16xf32>
    %122 = arith.subf %118, %121 : vector<16x16xf32>
    %123 = math.exp %122 : vector<16x16xf32>
    %cst_63 = arith.constant dense<0.000000e+00> : vector<16xf32>
    %124 = vector.multi_reduction <add>, %123, %cst_63 [1] : vector<16x16xf32> to vector<16xf32>
    %125 = vector.shape_cast %124 : vector<16xf32> to vector<16x1xf32>
    %126 = arith.truncf %123 : vector<16x16xf32> to vector<16x16xbf16>
    %127 = arith.truncf %102 : vector<16x128xf32> to vector<16x128xbf16>
    %cst_64 = arith.constant dense<0.000000e+00> : vector<16x128xf32>
    %128 = tpu.matmul %126, %127, %cst_64 {dimension_numbers = #tpu.dot_dimension_numbers<[1], [0], [0], [1], [0, 0, 1, 1], [], []>} : vector<16x16xbf16>, vector<16x128xbf16>, vector<16x128xf32> -> vector<16x128xf32>
    %129 = tpu.reciprocal %125 {approx = true} : vector<16x1xf32> -> vector<16x1xf32>
    %130 = vector.broadcast %129 : vector<16x1xf32> to vector<16x128xf32>
    %131 = arith.mulf %128, %130 : vector<16x128xf32>
    %cst_65 = arith.constant 0.000000e+00 : f32
    %132 = vector.broadcast %cst_65 : f32 to vector<16x128xf32>
    %133 = arith.cmpf ogt, %131, %132 : vector<16x128xf32>
    %cst_66 = arith.constant 0.000000e+00 : f32
    %134 = vector.broadcast %cst_66 : f32 to vector<16x128xf32>
    %135 = arith.minimumf %131, %134 : vector<16x128xf32>
    %136 = math.exp %135 : vector<16x128xf32>
    %cst_67 = arith.constant 1.000000e+00 : f32
    %137 = vector.broadcast %cst_67 : f32 to vector<16x128xf32>
    %138 = arith.subf %136, %137 : vector<16x128xf32>
    %139 = arith.select %133, %131, %138 : vector<16x128xi1>, vector<16x128xf32>
    %140 = tpu.iota {dimensions = array<i32: 1>} : vector<16x128xi32>
    %c8_i32 = arith.constant 8 : i32
    %141 = vector.broadcast %c8_i32 : i32 to vector<16x128xi32>
    %142 = arith.cmpi slt, %140, %141 : vector<16x128xi32>
    %cst_68 = arith.constant -9.000000e+15 : f32
    %143 = vector.broadcast %cst_68 : f32 to vector<16x128xf32>
    %144 = arith.select %142, %139, %143 : vector<16x128xi1>, vector<16x128xf32>
    %cst_69 = arith.constant dense<0xFF800000> : vector<16xf32>
    %145 = vector.multi_reduction <maximumf>, %144, %cst_69 [1] : vector<16x128xf32> to vector<16xf32>
    %146 = vector.shape_cast %145 : vector<16xf32> to vector<16x1xf32>
    %147 = vector.broadcast %146 : vector<16x1xf32> to vector<16x128xf32>
    %148 = arith.subf %144, %147 : vector<16x128xf32>
    %149 = math.exp %148 : vector<16x128xf32>
    %cst_70 = arith.constant dense<0.000000e+00> : vector<16xf32>
    %150 = vector.multi_reduction <add>, %149, %cst_70 [1] : vector<16x128xf32> to vector<16xf32>
    %151 = vector.shape_cast %150 : vector<16xf32> to vector<16x1xf32>
    %152 = math.log %151 : vector<16x1xf32>
    %153 = vector.broadcast %152 : vector<16x1xf32> to vector<16x128xf32>
    %154 = arith.subf %148, %153 : vector<16x128xf32>
    %c0_71 = arith.constant 0 : index
    %c0_72 = arith.constant 0 : index
    %155 = vector.load %arg17[%c0_71, %c0_72] : memref<16x128xf32, #tpu.memory_space<vmem>>, vector<16x128xf32>
    tpu.vector_store %arg17[%c0_71, %c0_72], %154 {strides = array<i32>} : memref<16x128xf32, #tpu.memory_space<vmem>>, vector<16x128xf32>,
    return
  }
}

</mosaic_0001>

<bundles_post_ra>
// kernel: gat_forward.1
= control target key start
LH: loop header
LB: loop body
LE: loop exit
PB: predicated region body
PF: predicated region fallthrough
CT: control target
= control target key end

     0   :  { %v957_v34 = vmov 0   ;;  %vm232_vm1 = vcmask 130048   ;;  %s1331_s2 = inlined_call_operand.vmem [shape: bf16[128,128], index: 2, kind: input, shape index: {}]   ;;  %s1332_s4 = inlined_call_operand.vmem [shape: f32[128,1], index: 4, kind: input, shape index: {}]   ;;  %s1333_s3 = inlined_call_operand.vmem [shape: f32[1,128], index: 3, kind: input, shape index: {}]   ;;  %s1334_s0 = inlined_call_operand.vmem [shape: f32[16,128], index: 0, kind: input, shape index: {}]   ;;  %s1335_s5 = inlined_call_operand.vmem [shape: f32[1,128], index: 5, kind: input, shape index: {}]   ;;  %s1336_s6 = inlined_call_operand.<no memory space> [shape: f32[1,1], index: 6, kind: input, shape index: {}]   ;;  %s1337_s1 = inlined_call_operand.vmem [shape: bf16[16,16], index: 1, kind: input, shape index: {}]   ;;  %s1338_s8 = inlined_call_operand.vmem [shape: f32[1,128], index: 8, kind: input, shape index: {}]   ;;  %s1339_s7 = inlined_call_operand.vmem [shape: bf16[128,128], index: 7, kind: input, shape index: {}]   ;;  %s1340_s9 = inlined_call_operand.vmem [shape: f32[128,1], index: 9, kind: input, shape index: {}]   ;;  %s1341_s10 = inlined_call_operand.vmem [shape: f32[1,128], index: 10, kind: input, shape index: {}]   ;;  %s1342_s11 = inlined_call_operand.<no memory space> [shape: f32[1,1], index: 11, kind: input, shape index: {}]   ;;  %s1343_s13 = inlined_call_operand.vmem [shape: f32[1,128], index: 13, kind: input, shape index: {}]   ;;  %s1344_s12 = inlined_call_operand.vmem [shape: bf16[128,128], index: 12, kind: input, shape index: {}]   ;;  %s1345_s14 = inlined_call_operand.vmem [shape: f32[128,1], index: 14, kind: input, shape index: {}]   ;;  %s1346_s15 = inlined_call_operand.vmem [shape: f32[1,128], index: 15, kind: input, shape index: {}]   ;;  %s1347_s16 = inlined_call_operand.<no memory space> [shape: f32[1,1], index: 16, kind: input, shape index: {}]   ;;  %s1348_s17 = inlined_call_operand.vmem [shape: f32[16,128], index: 17, kind: output, shape index: {}]  }
   0x1   :  { %1351 = sst [smem:[#allocation5_spill]] %s1331_s2  ;;  %v64_v21 = vld [vmem:[%s1334_s0] sm:$0xff]  ;;  %v65_v22 = vld [vmem:[%s1334_s0 + $0x8] sm:$0xff]  ;;  %903 = vset.pattern.permute.xlu0 %v957_v34  ;;  %904 = vset.pattern.permute.xlu1 %v957_v34  ;;  %v166_v35 = vstv %s1336_s6 }
   0x2   :  { %1352 = sst [smem:[#allocation6_spill]] %s1332_s4  ;;  %v66_v24 = vpack.c.bf16 %v65_v22, %v64_v21  ;;  %v906_v27 = vld [vmem:[%s1333_s3] ss:$0 sm:$0xff]  ;;  %905 = vset.pattern.permute.xlu2 %v957_v34  ;;  %v380_v21 = vld [vmem:[%s1340_s9 + $0x58] sm:$0xff]  ;;  %v374_v34 = vld [vmem:[%s1340_s9 + $0x28] sm:$0xff] }
   0x3   :  { %s1353_s26 = sld [smem:[#allocation5_spill]]  ;;  %v190_v33 = vld [vmem:[%s1335_s5] sm:$0x1] }
   0x4   :  { %s1354_s30 = sld [smem:[#allocation6_spill]]  ;;  %v899_v42 = vld [vmem:[%s1337_s1] sm:$0xff]  }
   0x5   :  { %v1138_v45 = vunpack.c.l.bf16 %v899_v42  ;;  %v1142_v52 = vunpack.c.h.bf16 %v899_v42 }
   0x9   :  { %v881_v0 = vld [vmem:[%s1353_s26 + $0x38] sm:$0xff]  ;;  %v880_v1 = vld [vmem:[%s1353_s26 + $0x30] sm:$0xff]  ;;  %v879_v5 = vld [vmem:[%s1353_s26 + $0x28] sm:$0xff] }
   0xa   :  { %135 = vmatpush.bf16.msra.mxu0 %v881_v0  ;;  %v164_v2 = vld [vmem:[%s1354_s30 + $0x78] sm:$0xff]  ;;  %v163_v3 = vld [vmem:[%s1354_s30 + $0x70] sm:$0xff]  ;;  %v162_v4 = vld [vmem:[%s1354_s30 + $0x68] sm:$0xff] }
   0xb   :  { %167 = vmatpush.msra.mxu1 %v164_v2  ;;  %v161_v6 = vld [vmem:[%s1354_s30 + $0x60] sm:$0xff]  ;;  %v160_v7 = vld [vmem:[%s1354_s30 + $0x58] sm:$0xff]  ;;  %v159_v9 = vld [vmem:[%s1354_s30 + $0x50] sm:$0xff] }
   0xc   :  { %v878_v8 = vld [vmem:[%s1353_s26 + $0x20] sm:$0xff]  ;;  %v158_v10 = vld [vmem:[%s1354_s30 + $0x48] sm:$0xff]  ;;  %v877_v11 = vld [vmem:[%s1353_s26 + $0x18] sm:$0xff] }
   0xd   :  { %168 = vmatpush.msra.mxu1 %v163_v3  ;;  %v157_v12 = vld [vmem:[%s1354_s30 + $0x40] sm:$0xff]  ;;  %v156_v13 = vld [vmem:[%s1354_s30 + $0x38] sm:$0xff]  ;;  %v876_v14 = vld [vmem:[%s1353_s26 + $0x10] sm:$0xff] }
   0xe   :  { %136 = vmatpush.bf16.msra.mxu0 %v880_v1  ;;  %v155_v15 = vld [vmem:[%s1354_s30 + $0x30] sm:$0xff]  ;;  %v154_v16 = vld [vmem:[%s1354_s30 + $0x28] sm:$0xff]  ;;  %v153_v18 = vld [vmem:[%s1354_s30 + $0x20] sm:$0xff] }
   0xf   :  { %169 = vmatpush.msra.mxu1 %v162_v4  ;;  %v875_v17 = vld [vmem:[%s1353_s26 + $0x8] sm:$0xff]  ;;  %v152_v19 = vld [vmem:[%s1354_s30 + $0x18] sm:$0xff]  ;;  %v874_v20 = vld [vmem:[%s1353_s26] sm:$0xff] }
  0x10   :  { %v151_v23 = vld [vmem:[%s1354_s30 + $0x10] sm:$0xff]  ;;  %v150_v25 = vld [vmem:[%s1354_s30 + $0x8] sm:$0xff]  ;;  %v149_v26 = vld [vmem:[%s1354_s30] sm:$0xff] }
  0x11   :  { %170 = vmatpush.msra.mxu1 %v161_v6  ;;  %v889_v4 = vld [vmem:[%s1339_s7 + $0x38] sm:$0xff]  ;;  %v887_v6 = vld [vmem:[%s1339_s7 + $0x28] sm:$0xff] }
  0x12   :  { %137 = vmatpush.bf16.msra.mxu0 %v879_v5  ;;  %v888_v5 = vld [vmem:[%s1339_s7 + $0x30] sm:$0xff] }
  0x13   :  { %171 = vmatpush.msra.mxu1 %v160_v7  ;;  %v886_v7 = vld [vmem:[%s1339_s7 + $0x20] sm:$0xff] }
  0x15   :  { %172 = vmatpush.msra.mxu1 %v159_v9  ;;  %v884_v9 = vld [vmem:[%s1339_s7 + $0x10] sm:$0xff] }
  0x16   :  { %138 = vmatpush.bf16.msra.mxu0 %v878_v8  ;;  %v885_v8 = vld [vmem:[%s1339_s7 + $0x18] sm:$0xff] }
  0x17   :  { %173 = vmatpush.msra.mxu1 %v158_v10  ;;  %v883_v10 = vld [vmem:[%s1339_s7 + $0x8] sm:$0xff] }
  0x19   :  { %174 = vmatpush.msra.mxu1 %v157_v12  ;;  %v882_v12 = vld [vmem:[%s1339_s7] sm:$0xff] }
  0x1a   :  { %139 = vmatpush.bf16.msra.mxu0 %v877_v11 }
  0x1b   :  { %175 = vmatpush.msra.mxu1 %v156_v13  ;;  %v384_v13 = vld [vmem:[%s1340_s9 + $0x78] sm:$0xff] }
  0x1c   :  { %387 = vmatpush.msra.mxu2 %v384_v13 }
  0x1d   :  { %176 = vmatpush.msra.mxu1 %v155_v15  ;;  %v382_v15 = vld [vmem:[%s1340_s9 + $0x68] sm:$0xff] }
  0x1e   :  { %140 = vmatpush.bf16.msra.mxu0 %v876_v14  ;;  %v383_v14 = vld [vmem:[%s1340_s9 + $0x70] sm:$0xff] }
  0x1f   :  { %177 = vmatpush.msra.mxu1 %v154_v16  ;;  %388 = vmatpush.msra.mxu2 %v383_v14 }
  0x21   :  { %178 = vmatpush.msra.mxu1 %v153_v18  ;;  %389 = vmatpush.msra.mxu2 %v382_v15 }
  0x22   :  { %141 = vmatpush.bf16.msra.mxu0 %v875_v17  ;;  %v381_v17 = vld [vmem:[%s1340_s9 + $0x60] sm:$0xff] }
  0x23   :  { %179 = vmatpush.msra.mxu1 %v152_v19  ;;  %390 = vmatpush.msra.mxu2 %v381_v17 }
  0x25   :  { %180 = vmatpush.msra.mxu1 %v151_v23  ;;  %v379_v23 = vld [vmem:[%s1340_s9 + $0x50] sm:$0xff]  ;;  %391 = vmatpush.msra.mxu2 %v380_v21 }
  0x26   :  { %142 = vmatpush.bf16.msra.mxu0 %v874_v20 }
  0x27   :  { %181 = vmatpush.msra.mxu1 %v150_v25  ;;  %392 = vmatpush.msra.mxu2 %v379_v23  ;;  %v896_v23 = vld [vmem:[%s1344_s12 + $0x30] sm:$0xff] }
  0x29   :  { %143 = vmatmul.bf16.vlgmr.msra.gmra.mxu0 %v66_v24  ;;  %182 = vmatpush.msra.mxu1 %v149_v26  ;;  %v378_v24 = vld [vmem:[%s1340_s9 + $0x48] sm:$0xff]  ;;  %v377_v26 = vld [vmem:[%s1340_s9 + $0x40] sm:$0xff] }
  0x2a   :  { %393 = vmatpush.msra.mxu2 %v378_v24  ;;  %v895_v24 = vld [vmem:[%s1344_s12 + $0x28] sm:$0xff] }
  0x2c   :  { %394 = vmatpush.msra.mxu2 %v377_v26  ;;  %v894_v26 = vld [vmem:[%s1344_s12 + $0x20] sm:$0xff] }
  0xa6   :  { %v144_v28 = vpop.f32.mrf.mxu0 }
  0xa7   :  { %v145_v29 = vadd.f32 %v906_v27, %v144_v28 }
  0xa9   :  { %183 = vmatmul.f32.vlgmr.msra.gmra.mxu1 %v145_v29 }
  0xae   :  { %v146_v30 = vpop.f32.mrf.mxu0 }
  0xaf   :  { %v147_v31 = vadd.f32 %v906_v27, %v146_v30  ;;  %v376_v30 = vld [vmem:[%s1340_s9 + $0x38] sm:$0xff] }
  0xb0   :  { %395 = vmatpush.msra.mxu2 %v376_v30 }
  0xb1   :  { %186 = vmatmul.f32.gmra.mxu1 %v147_v31  ;;  %v252_v32 = vpack.c.bf16 %v147_v31, %v145_v29 }
  0xb2   :  { %205 = vmatpush.xpose.msrb.mxu1 %v147_v31 }
  0xb3   :  { %263 = vmatpush.bf16.msra.mxu3 %v252_v32  ;;  %v375_v32 = vld [vmem:[%s1340_s9 + $0x30] sm:$0xff] }
  0xb4   :  { %396 = vmatpush.msra.mxu2 %v375_v32 }
  0xb6   :  { %206 = vmatpush.xpose.msrb.mxu1 %v145_v29  ;;  %397 = vmatpush.msra.mxu2 %v374_v34 }
  0xb7   :  { %355 = vmatpush.bf16.msrb.mxu3 %v889_v4 }
  0xb9   :  { %207 = vmatmul.f32.vlgmr.msrb.gmra.mxu1 %v190_v33 }
  0xbb   :  { %356 = vmatpush.bf16.msrb.mxu3 %v888_v5 }
  0xbf   :  { %357 = vmatpush.bf16.msrb.mxu3 %v887_v6 }
  0xc3   :  { %358 = vmatpush.bf16.msrb.mxu3 %v886_v7 }
  0xc7   :  { %359 = vmatpush.bf16.msrb.mxu3 %v885_v8 }
  0xcb   :  { %360 = vmatpush.bf16.msrb.mxu3 %v884_v9 }
  0xcf   :  { %361 = vmatpush.bf16.msrb.mxu3 %v883_v10 }
  0xd3   :  { %362 = vmatpush.bf16.msrb.mxu3 %v882_v12 }
 0x126   :  { %v184_v36 = vpop.f32.mrf.mxu1 }
 0x127   :  { %v185_v37 = vadd.f32 %v184_v36, %v166_v35 }
 0x129   :  { %213 = vperm.xlu0 %903, %v185_v37   ;;  %v372_v37 = vld [vmem:[%s1340_s9 + $0x18] sm:$0xff] }
 0x12e   :  { %v187_v38 = vpop.f32.mrf.mxu1 }
 0x12f   :  { %v188_v39 = vadd.f32 %v187_v38, %v166_v35  ;;  %v373_v35 = vld [vmem:[%s1340_s9 + $0x20] sm:$0xff]  ;;  %v371_v38 = vld [vmem:[%s1340_s9 + $0x10] sm:$0xff] }
 0x130   :  { %398 = vmatpush.msra.mxu2 %v373_v35 }
 0x131   :  { %218 = vperm.xlu0 %903, %v188_v39  }
 0x132   :  { %399 = vmatpush.msra.mxu2 %v372_v37 }
 0x134   :  { %400 = vmatpush.msra.mxu2 %v371_v38 }
 0x136   :  { %v208_v40 = vpop.f32.mrf.mxu1 }
 0x137   :  { %v221_v41 = vperm.slane %v208_v40, 0 }
 0x19b   :  { %v214_v43 = vpop.permute.xlu0 %213 }
 0x19c   :  { %v222_v44 = vadd.f32 %v221_v41, %v214_v43 }
 0x19e   :  { %v226_v46 = vmul.f32 0.2, %v222_v44  ;;  %vm224_vm0 = vcmp.gt.f32.partialorder %v222_v44, 0.0 }
 0x1a0   :  { %v228_v47 = vsel %vm224_vm0, %v222_v44, %v226_v46  ;;  %v370_v46 = vld [vmem:[%s1340_s9 + $0x8] sm:$0xff] }
 0x1a1   :  { %v230_v48 = vadd.f32 %v1138_v45, %v228_v47  ;;  %401 = vmatpush.msra.mxu2 %v370_v46  ;;  %v369_v47 = vld [vmem:[%s1340_s9] sm:$0xff] }
 0x1a3   :  { %v219_v49 = vpop.permute.xlu0 %218  ;;  %v233_v50 = vsel %vm232_vm1, %v230_v48, -inf  ;;  %402 = vmatpush.msra.mxu2 %v369_v47  ;;  %v612_v47 = vld [vmem:[%s1345_s14 + $0x60] sm:$0xff] }
 0x1a4   :  { %v223_v51 = vadd.f32 %v221_v41, %v219_v49  ;;  %234 = vmax.xlane.f32.xlu1 %v233_v50 }
 0x1a6   :  { %vm225_vm2 = vcmp.gt.f32.partialorder %v223_v51, 0.0  ;;  %v227_v53 = vmul.f32 0.2, %v223_v51 }
 0x1a8   :  { %v229_v54 = vsel %vm225_vm2, %v223_v51, %v227_v53 }
 0x1a9   :  { %v231_v55 = vadd.f32 %v1142_v52, %v229_v54 }
 0x1ab   :  { %v236_v56 = vsel %vm232_vm1, %v231_v55, -inf }
 0x1ac   :  { %237 = vmax.xlane.f32.xlu1 %v236_v56  ;;  %v386_v56 = vstv %s1342_s11 }
 0x217   :  { %v235_v57 = vpop.xlane.xlu1 %234 }
 0x218   :  { %v239_v58 = vsub.f32 %v230_v48, %v235_v57  ;;  %v907_v48 = vld [vmem:[%s1338_s8] ss:$0 sm:$0xff] }
 0x21a   :  { %v241_v59 = vmul.f32 1.442695, %v239_v58 }
 0x21c   :  { %909 = vpow2.f32 %v241_v59 }
 0x21f   :  { %v238_v60 = vpop.xlane.xlu1 %237 }
 0x220   :  { %v240_v61 = vsub.f32 %v231_v55, %v238_v60  ;;  %v410_v55 = vld [vmem:[%s1341_s10] sm:$0x1] }
 0x222   :  { %v910_v62 = vpop.eup %909  ;;  %v243_v63 = vmul.f32 1.442695, %v240_v61 }
 0x223   :  { %v245_v0 = vsel %vm232_vm1, %v910_v62, 0.0 }
 0x224   :  { %911 = vpow2.f32 %v243_v63  ;;  %246 = vadd.xlane.f32.xlu2 %v245_v0 }
 0x22a   :  { %v912_v1 = vpop.eup %911 }
 0x22b   :  { %v248_v2 = vsel %vm232_vm1, %v912_v1, 0.0  ;;  %v251_v3 = vpack.c.bf16 %v912_v1, %v910_v62 }
 0x22c   :  { %249 = vadd.xlane.f32.xlu2 %v248_v2 }
 0x22d   :  { %799 = vmatmul.msk.bf16.vlgmr.msra.gmra.mxu3 %vm232_vm1, %v251_v3 }
 0x297   :  { %v247_v11 = vpop.xlane.xlu2 %246 }
 0x298   :  { %913 = vrcp.f32 %v247_v11 }
 0x29e   :  { %v914_v18 = vpop.eup %913 }
 0x29f   :  { %v250_v16 = vpop.xlane.xlu2 %249 }
 0x2a0   :  { %915 = vrcp.f32 %v250_v16 }
 0x2a6   :  { %v916_v27 = vpop.eup %915 }
 0x2b0   :  { %v265_v19 = vpop.f32.mrf.mxu3 }
 0x2b1   :  { %v272_v20 = vmul.f32 %v914_v18, %v265_v19 }
 0x2b3   :  { %v276_v22 = vmin.f32 %v272_v20, 0.0  ;;  %vm274_vm3 = vcmp.gt.f32.partialorder %v272_v20, 0.0 }
 0x2b5   :  { %v278_v25 = vmul.f32 1.442695, %v276_v22  ;;  %v897_v22 = vld [vmem:[%s1344_s12 + $0x38] sm:$0xff] }
 0x2b6   :  { %586 = vmatpush.bf16.msra.mxu3 %v897_v22 }
 0x2b7   :  { %917 = vpow2.f32 %v278_v25 }
 0x2b8   :  { %v267_v28 = vpop.f32.mrf.mxu3 }
 0x2b9   :  { %v273_v29 = vmul.f32 %v916_v27, %v267_v28  ;;  %v893_v27 = vld [vmem:[%s1344_s12 + $0x18] sm:$0xff]  ;;  %v892_v28 = vld [vmem:[%s1344_s12 + $0x10] sm:$0xff] }
 0x2ba   :  { %587 = vmatpush.bf16.msra.mxu3 %v896_v23 }
 0x2bb   :  { %v277_v31 = vmin.f32 %v273_v29, 0.0  ;;  %vm275_vm4 = vcmp.gt.f32.partialorder %v273_v29, 0.0 }
 0x2bd   :  { %v280_v33 = vmul.f32 1.442695, %v277_v31  ;;  %v918_v36 = vpop.eup %917 }
 0x2be   :  { %v800_v39 = vadd.f32 -1.0, %v918_v36  ;;  %588 = vmatpush.bf16.msra.mxu3 %v895_v24  ;;  %v890_v36 = vld [vmem:[%s1344_s12] sm:$0xff] }
 0x2bf   :  { %919 = vpow2.f32 %v280_v33  ;;  %v891_v33 = vld [vmem:[%s1344_s12 + $0x8] sm:$0xff] }
 0x2c0   :  { %v284_v42 = vsel %vm274_vm3, %v272_v20, %v800_v39 }
 0x2c2   :  { %589 = vmatpush.bf16.msra.mxu3 %v894_v26 }
 0x2c5   :  { %v920_v40 = vpop.eup %919 }
 0x2c6   :  { %v801_v41 = vadd.f32 -1.0, %v920_v40  ;;  %590 = vmatpush.bf16.msra.mxu3 %v893_v27  ;;  %v615_v40 = vld [vmem:[%s1345_s14 + $0x78] sm:$0xff] }
 0x2c7   :  { %618 = vmatpush.msrb.mxu2 %v615_v40 }
 0x2c8   :  { %v285_v43 = vsel %vm275_vm4, %v273_v29, %v801_v41  ;;  %v614_v41 = vld [vmem:[%s1345_s14 + $0x70] sm:$0xff] }
 0x2c9   :  { %v286_v44 = vpack.c.bf16 %v285_v43, %v284_v42  ;;  %v613_v43 = vld [vmem:[%s1345_s14 + $0x68] sm:$0xff]  ;;  %619 = vmatpush.msrb.mxu2 %v614_v41 }
 0x2ca   :  { %591 = vmatpush.bf16.msra.mxu3 %v892_v28 }
 0x2cb   :  { %363 = vmatmul.bf16.vlgmr.msrb.gmra.mxu3 %v286_v44  ;;  %620 = vmatpush.msrb.mxu2 %v613_v43 }
 0x2cd   :  { %621 = vmatpush.msrb.mxu2 %v612_v47 }
 0x2ce   :  { %592 = vmatpush.bf16.msra.mxu3 %v891_v33 }
 0x2d2   :  { %593 = vmatpush.bf16.msra.mxu3 %v890_v36 }
 0x34e   :  { %v364_v49 = vpop.f32.mrf.mxu3 }
 0x34f   :  { %v365_v50 = vadd.f32 %v907_v48, %v364_v49  ;;  %v611_v49 = vld [vmem:[%s1345_s14 + $0x58] sm:$0xff] }
 0x350   :  { %622 = vmatpush.msrb.mxu2 %v611_v49 }
 0x351   :  { %403 = vmatmul.f32.vlgmr.msra.gmra.mxu2 %v365_v50 }
 0x356   :  { %v366_v51 = vpop.f32.mrf.mxu3 }
 0x357   :  { %v367_v53 = vadd.f32 %v907_v48, %v366_v51 }
 0x359   :  { %v471_v54 = vpack.c.bf16 %v367_v53, %v365_v50  ;;  %406 = vmatmul.f32.gmra.mxu2 %v367_v53  ;;  %425 = vmatpush.xpose.msrb.mxu0 %v367_v53  ;;  %v610_v53 = vld [vmem:[%s1345_s14 + $0x50] sm:$0xff] }
 0x35a   :  { %623 = vmatpush.msrb.mxu2 %v610_v53 }
 0x35b   :  { %482 = vmatpush.bf16.msra.mxu1 %v471_v54  ;;  %v609_v54 = vld [vmem:[%s1345_s14 + $0x48] sm:$0xff] }
 0x35c   :  { %624 = vmatpush.msrb.mxu2 %v609_v54 }
 0x35d   :  { %426 = vmatpush.xpose.msrb.mxu0 %v365_v50 }
 0x360   :  { %427 = vmatmul.f32.vlgmr.msrb.gmra.mxu0 %v410_v55 }
 0x3d4   :  { %v404_v57 = vpop.f32.mrf.mxu2 }
 0x3d5   :  { %v405_v58 = vadd.f32 %v404_v57, %v386_v56  ;;  %v608_v57 = vld [vmem:[%s1345_s14 + $0x40] sm:$0xff] }
 0x3d6   :  { %625 = vmatpush.msrb.mxu2 %v608_v57  ;;  %v736_v57 = vlaneseq }
 0x3d7   :  { %433 = vperm.xlu0 %903, %v405_v58  }
 0x3dc   :  { %v407_v59 = vpop.f32.mrf.mxu2 }
 0x3dd   :  { %v408_v60 = vadd.f32 %v407_v59, %v386_v56  ;;  %v428_v61 = vpop.f32.mrf.mxu0  ;;  %v607_v59 = vld [vmem:[%s1345_s14 + $0x38] sm:$0xff] }
 0x3de   :  { %v441_v62 = vperm.slane %v428_v61, 0  ;;  %626 = vmatpush.msrb.mxu2 %v607_v59 }
 0x3df   :  { %438 = vperm.xlu1 %904, %v408_v60  }
 0x449   :  { %v434_v63 = vpop.permute.xlu0 %433 }
 0x44a   :  { %v442_v0 = vadd.f32 %v441_v62, %v434_v63 }
 0x44c   :  { %vm444_vm5 = vcmp.gt.f32.partialorder %v442_v0, 0.0  ;;  %v446_v1 = vmul.f32 0.2, %v442_v0 }
 0x44e   :  { %v448_v2 = vsel %vm444_vm5, %v442_v0, %v446_v1  ;;  %v605_v0 = vld [vmem:[%s1345_s14 + $0x28] sm:$0xff]  ;;  %v604_v1 = vld [vmem:[%s1345_s14 + $0x20] sm:$0xff] }
 0x44f   :  { %v450_v3 = vadd.f32 %v1138_v45, %v448_v2 }
 0x451   :  { %v439_v4 = vpop.permute.xlu1 %438  ;;  %v452_v5 = vsel %vm232_vm1, %v450_v3, -inf }
 0x452   :  { %v443_v6 = vadd.f32 %v441_v62, %v439_v4  ;;  %453 = vmax.xlane.f32.xlu2 %v452_v5  ;;  %v606_v62 = vld [vmem:[%s1345_s14 + $0x30] sm:$0xff] }
 0x453   :  { %627 = vmatpush.msrb.mxu2 %v606_v62  ;;  %v602_v4 = vld [vmem:[%s1345_s14 + $0x10] sm:$0xff] }
 0x454   :  { %vm445_vm6 = vcmp.gt.f32.partialorder %v443_v6, 0.0  ;;  %v447_v7 = vmul.f32 0.2, %v443_v6 }
 0x455   :  { %628 = vmatpush.msrb.mxu2 %v605_v0 }
 0x456   :  { %v449_v8 = vsel %vm445_vm6, %v443_v6, %v447_v7 }
 0x457   :  { %v451_v9 = vadd.f32 %v1142_v52, %v449_v8  ;;  %629 = vmatpush.msrb.mxu2 %v604_v1 }
 0x459   :  { %v455_v10 = vsel %vm232_vm1, %v451_v9, -inf }
 0x45a   :  { %456 = vmax.xlane.f32.xlu0 %v455_v10 }
 0x4c5   :  { %v454_v11 = vpop.xlane.xlu2 %453 }
 0x4c6   :  { %v458_v12 = vsub.f32 %v450_v3, %v454_v11  ;;  %v603_v3 = vld [vmem:[%s1345_s14 + $0x18] sm:$0xff]  ;;  %v601_v11 = vld [vmem:[%s1345_s14 + $0x8] sm:$0xff] }
 0x4c7   :  { %630 = vmatpush.msrb.mxu2 %v603_v3 }
 0x4c8   :  { %v460_v13 = vmul.f32 1.442695, %v458_v12  ;;  %v600_v12 = vld [vmem:[%s1345_s14] sm:$0xff] }
 0x4c9   :  { %631 = vmatpush.msrb.mxu2 %v602_v4 }
 0x4ca   :  { %921 = vpow2.f32 %v460_v13  ;;  %v908_v13 = vld [vmem:[%s1343_s13] ss:$0 sm:$0xff] }
 0x4cb   :  { %632 = vmatpush.msrb.mxu2 %v601_v11 }
 0x4cd   :  { %v457_v14 = vpop.xlane.xlu0 %456  ;;  %633 = vmatpush.msrb.mxu2 %v600_v12 }
 0x4ce   :  { %v459_v15 = vsub.f32 %v451_v9, %v457_v14 }
 0x4d0   :  { %v922_v16 = vpop.eup %921  ;;  %v462_v17 = vmul.f32 1.442695, %v459_v15 }
 0x4d1   :  { %v464_v18 = vsel %vm232_vm1, %v922_v16, 0.0 }
 0x4d2   :  { %923 = vpow2.f32 %v462_v17  ;;  %465 = vadd.xlane.f32.xlu2 %v464_v18 }
 0x4d8   :  { %v924_v19 = vpop.eup %923 }
 0x4d9   :  { %v470_v20 = vpack.c.bf16 %v924_v19, %v922_v16  ;;  %v467_v21 = vsel %vm232_vm1, %v924_v19, 0.0  ;;  %v641_v19 = vld [vmem:[%s1346_s15] sm:$0x1] }
 0x4da   :  { %468 = vadd.xlane.f32.xlu2 %v467_v21 }
 0x4db   :  { %834 = vmatmul.msk.bf16.vlgmr.msra.gmra.mxu1 %vm232_vm1, %v470_v20  ;;  %v617_v20 = vstv %s1347_s16 }
 0x545   :  { %v466_v25 = vpop.xlane.xlu2 %465 }
 0x546   :  { %925 = vrcp.f32 %v466_v25 }
 0x54c   :  { %v926_v30 = vpop.eup %925 }
 0x54d   :  { %v469_v29 = vpop.xlane.xlu2 %468 }
 0x54e   :  { %927 = vrcp.f32 %v469_v29 }
 0x554   :  { %v928_v37 = vpop.eup %927 }
 0x558   :  { %v484_v31 = vpop.f32.mrf.mxu1 }
 0x559   :  { %v491_v32 = vmul.f32 %v926_v30, %v484_v31 }
 0x55b   :  { %v495_v34 = vmin.f32 %v491_v32, 0.0  ;;  %vm493_vm7 = vcmp.gt.f32.partialorder %v491_v32, 0.0 }
 0x55d   :  { %v497_v35 = vmul.f32 1.442695, %v495_v34 }
 0x55f   :  { %929 = vpow2.f32 %v497_v35 }
 0x560   :  { %v486_v38 = vpop.f32.mrf.mxu1 }
 0x561   :  { %v492_v39 = vmul.f32 %v928_v37, %v486_v38 }
 0x563   :  { %v496_v42 = vmin.f32 %v492_v39, 0.0  ;;  %vm494_vm8 = vcmp.gt.f32.partialorder %v492_v39, 0.0 }
 0x565   :  { %v930_v44 = vpop.eup %929  ;;  %v499_v46 = vmul.f32 1.442695, %v496_v42 }
 0x566   :  { %v835_v48 = vadd.f32 -1.0, %v930_v44 }
 0x567   :  { %931 = vpow2.f32 %v499_v46 }
 0x568   :  { %v503_v50 = vsel %vm493_vm7, %v491_v32, %v835_v48 }
 0x569   :  { %v507_v51 = vmin.f32 %v503_v50, 0.0  ;;  %vm505_vm9 = vcmp.gt.f32.partialorder %v503_v50, 0.0 }
 0x56b   :  { %v509_v56 = vmul.f32 1.442695, %v507_v51 }
 0x56d   :  { %v932_v55 = vpop.eup %931  ;;  %933 = vpow2.f32 %v509_v56 }
 0x56e   :  { %v836_v58 = vadd.f32 -1.0, %v932_v55 }
 0x570   :  { %v504_v60 = vsel %vm494_vm8, %v492_v39, %v836_v58 }
 0x571   :  { %v508_v61 = vmin.f32 %v504_v60, 0.0  ;;  %vm506_vm10 = vcmp.gt.f32.partialorder %v504_v60, 0.0 }
 0x573   :  { %v511_v63 = vmul.f32 1.442695, %v508_v61  ;;  %v934_v2 = vpop.eup %933  ;;  %v737_v61 = vand.u32 127, %v736_v57 }
 0x574   :  { %v837_v5 = vadd.f32 -1.0, %v934_v2 }
 0x575   :  { %935 = vpow2.f32 %v511_v63  ;;  %vm738_vm13 = vcmp.lt.s32.totalorder %v737_v61, 8 }
 0x576   :  { %v515_v8 = vsel %vm505_vm9, %v503_v50, %v837_v5 }
 0x57b   :  { %v936_v6 = vpop.eup %935 }
 0x57c   :  { %v838_v7 = vadd.f32 -1.0, %v936_v6 }
 0x57e   :  { %v516_v9 = vsel %vm506_vm10, %v504_v60, %v838_v7 }
 0x57f   :  { %v517_v10 = vpack.c.bf16 %v516_v9, %v515_v8 }
 0x581   :  { %594 = vmatmul.bf16.vlgmr.msra.gmra.mxu3 %v517_v10 }
 0x604   :  { %v595_v14 = vpop.f32.mrf.mxu3 }
 0x605   :  { %v596_v15 = vadd.f32 %v908_v13, %v595_v14 }
 0x607   :  { %634 = vmatmul.f32.vlgmr.msrb.gmra.mxu2 %v596_v15 }
 0x60c   :  { %v597_v16 = vpop.f32.mrf.mxu3 }
 0x60d   :  { %v598_v17 = vadd.f32 %v908_v13, %v597_v16 }
 0x60f   :  { %637 = vmatmul.f32.gmra.mxu2 %v598_v17  ;;  %656 = vmatpush.xpose.msra.mxu0 %v598_v17  ;;  %v702_v18 = vpack.c.bf16 %v598_v17, %v596_v15 }
 0x613   :  { %657 = vmatpush.xpose.msra.mxu0 %v596_v15 }
 0x616   :  { %658 = vmatmul.f32.vlgmr.msra.gmra.mxu0 %v641_v19 }
 0x617   :  { %713 = vmatpush.bf16.msrb.mxu0 %v702_v18 }
 0x68a   :  { %v635_v21 = vpop.f32.mrf.mxu2 }
 0x68b   :  { %v636_v22 = vadd.f32 %v635_v21, %v617_v20 }
 0x68d   :  { %664 = vperm.xlu2 %905, %v636_v22  }
 0x692   :  { %v638_v23 = vpop.f32.mrf.mxu2 }
 0x693   :  { %v639_v24 = vadd.f32 %v638_v23, %v617_v20  ;;  %v659_v25 = vpop.f32.mrf.mxu0 }
 0x694   :  { %v672_v26 = vperm.slane %v659_v25, 0 }
 0x695   :  { %669 = vperm.xlu1 %904, %v639_v24  }
 0x6e7   :  { %v665_v27 = vpop.permute.xlu2 %664 }
 0x6e8   :  { %v673_v28 = vadd.f32 %v672_v26, %v665_v27 }
 0x6ea   :  { %vm675_vm11 = vcmp.gt.f32.partialorder %v673_v28, 0.0  ;;  %v677_v29 = vmul.f32 0.2, %v673_v28 }
 0x6ec   :  { %v679_v30 = vsel %vm675_vm11, %v673_v28, %v677_v29 }
 0x6ed   :  { %v681_v31 = vadd.f32 %v1138_v45, %v679_v30 }
 0x6ef   :  { %v683_v32 = vsel %vm232_vm1, %v681_v31, -inf }
 0x6f0   :  { %684 = vmax.xlane.f32.xlu1 %v683_v32 }
 0x707   :  { %v670_v33 = vpop.permute.xlu1 %669 }
 0x708   :  { %v674_v34 = vadd.f32 %v672_v26, %v670_v33 }
 0x70a   :  { %vm676_vm12 = vcmp.gt.f32.partialorder %v674_v34, 0.0  ;;  %v678_v35 = vmul.f32 0.2, %v674_v34 }
 0x70c   :  { %v680_v36 = vsel %vm676_vm12, %v674_v34, %v678_v35 }
 0x70d   :  { %v682_v37 = vadd.f32 %v1142_v52, %v680_v36 }
 0x70f   :  { %v686_v38 = vsel %vm232_vm1, %v682_v37, -inf }
 0x710   :  { %687 = vmax.xlane.f32.xlu2 %v686_v38 }
 0x763   :  { %v685_v39 = vpop.xlane.xlu1 %684 }
 0x764   :  { %v689_v40 = vsub.f32 %v681_v31, %v685_v39 }
 0x766   :  { %v691_v41 = vmul.f32 1.442695, %v689_v40 }
 0x768   :  { %937 = vpow2.f32 %v691_v41 }
 0x76e   :  { %v938_v42 = vpop.eup %937 }
 0x76f   :  { %v695_v45 = vsel %vm232_vm1, %v938_v42, 0.0 }
 0x770   :  { %696 = vadd.xlane.f32.xlu0 %v695_v45 }
 0x783   :  { %v688_v43 = vpop.xlane.xlu2 %687 }
 0x784   :  { %v690_v44 = vsub.f32 %v682_v37, %v688_v43 }
 0x786   :  { %v693_v46 = vmul.f32 1.442695, %v690_v44 }
 0x788   :  { %939 = vpow2.f32 %v693_v46 }
 0x78e   :  { %v940_v47 = vpop.eup %939 }
 0x78f   :  { %v701_v48 = vpack.c.bf16 %v940_v47, %v938_v42  ;;  %v698_v49 = vsel %vm232_vm1, %v940_v47, 0.0 }
 0x790   :  { %699 = vadd.xlane.f32.xlu0 %v698_v49 }
 0x791   :  { %871 = vmatmul.msk.bf16.vlgmr.msrb.gmra.mxu0 %vm232_vm1, %v701_v48 }
 0x7e3   :  { %v697_v52 = vpop.xlane.xlu0 %696 }
 0x7e4   :  { %941 = vrcp.f32 %v697_v52 }
 0x7ea   :  { %v942_v51 = vpop.eup %941 }
 0x803   :  { %v700_v50 = vpop.xlane.xlu0 %699 }
 0x804   :  { %943 = vrcp.f32 %v700_v50 }
 0x80a   :  { %v944_v58 = vpop.eup %943 }
 0x80e   :  { %v715_v53 = vpop.f32.mrf.mxu0 }
 0x80f   :  { %v722_v54 = vmul.f32 %v942_v51, %v715_v53 }
 0x811   :  { %v726_v55 = vmin.f32 %v722_v54, 0.0  ;;  %vm724_vm14 = vcmp.gt.f32.partialorder %v722_v54, 0.0 }
 0x813   :  { %v728_v56 = vmul.f32 1.442695, %v726_v55 }
 0x815   :  { %945 = vpow2.f32 %v728_v56 }
 0x816   :  { %v717_v59 = vpop.f32.mrf.mxu0 }
 0x817   :  { %v723_v60 = vmul.f32 %v944_v58, %v717_v59 }
 0x819   :  { %v727_v62 = vmin.f32 %v723_v60, 0.0  ;;  %vm725_vm15 = vcmp.gt.f32.partialorder %v723_v60, 0.0 }
 0x81b   :  { %v946_v63 = vpop.eup %945  ;;  %v730_v0 = vmul.f32 1.442695, %v727_v62 }
 0x81c   :  { %v872_v1 = vadd.f32 -1.0, %v946_v63 }
 0x81d   :  { %947 = vpow2.f32 %v730_v0 }
 0x81e   :  { %v734_v2 = vsel %vm724_vm14, %v722_v54, %v872_v1 }
 0x81f   :  { %v739_v3 = vsel %vm738_vm13, %v734_v2, -9e+15 }
 0x820   :  { %741 = vmax.xlane.f32.xlu0 %v739_v3 }
 0x823   :  { %v948_v4 = vpop.eup %947 }
 0x824   :  { %v873_v5 = vadd.f32 -1.0, %v948_v4 }
 0x826   :  { %v735_v6 = vsel %vm725_vm15, %v723_v60, %v873_v5 }
 0x827   :  { %v740_v7 = vsel %vm738_vm13, %v735_v6, -9e+15 }
 0x828   :  { %743 = vmax.xlane.f32.xlu0 %v740_v7 }
 0x893   :  { %v742_v8 = vpop.xlane.xlu0 %741 }
 0x894   :  { %v745_v9 = vsub.f32 %v739_v3, %v742_v8 }
 0x896   :  { %v747_v10 = vmul.f32 1.442695, %v745_v9 }
 0x898   :  { %949 = vpow2.f32 %v747_v10 }
 0x89b   :  { %v744_v11 = vpop.xlane.xlu0 %743 }
 0x89c   :  { %v746_v12 = vsub.f32 %v740_v7, %v744_v11 }
 0x89e   :  { %v950_v13 = vpop.eup %949  ;;  %v749_v14 = vmul.f32 1.442695, %v746_v12 }
 0x89f   :  { %751 = vadd.xlane.f32.xlu1 %v950_v13 }
 0x8a0   :  { %951 = vpow2.f32 %v749_v14 }
 0x8a6   :  { %v952_v15 = vpop.eup %951 }
 0x8a7   :  { %753 = vadd.xlane.f32.xlu0 %v952_v15 }
 0x912   :  { %v752_v16 = vpop.xlane.xlu1 %751 }
 0x913   :  { %953 = vlog2.f32 %v752_v16 }
 0x919   :  { %v954_v17 = vpop.eup %953 }
 0x91a   :  { %v756_v18 = vmul.f32 0.6931472, %v954_v17  ;;  %v754_v19 = vpop.xlane.xlu0 %753 }
 0x91b   :  { %955 = vlog2.f32 %v754_v19 }
 0x91c   :  { %v759_v20 = vsub.f32 %v745_v9, %v756_v18 }
 0x91e   :  { %761 = vst [vmem:[%s1348_s17] sm:$0xff] %v759_v20 }
 0x921   :  { %v956_v21 = vpop.eup %955 }
 0x922   :  { %v758_v22 = vmul.f32 0.6931472, %v956_v21 }
 0x924   :  { %v760_v23 = vsub.f32 %v746_v12, %v758_v22 }
 0x926   :  { %762 = vst [vmem:[%s1348_s17 + $0x8] sm:$0xff] %v760_v23 }

</bundles_post_ra>
